<compile_context>
chip_gen: v6e
topology: v6e:2x2x1
jax: 0.10.0
libtpu: 0.0.40
codegen_flags: <defaults>
</compile_context>

<pallas_src>
import functools

import jax
import jax.numpy as jnp
from jax.experimental import pallas as pl
from jax.experimental.pallas import tpu as pltpu


# ------------------------------ small helpers ------------------------------


def _round_up(x, m):
    return (x + m - 1) // m * m


def _pad2(x, rows, cols):
    r, c = x.shape
    return jnp.pad(x, ((0, rows - r), (0, cols - c)))


def _vmem_limit_bytes():
    """Per-generation scoped-VMEM budget: ~96 MiB on 128-MiB chips (v5e/v6e),
    ~48 MiB on 64-MiB chips (v7x)."""
    cap = 128 * 1024 * 1024
    try:
        info = pltpu.get_tpu_info()
        cap = int(getattr(info, "vmem_capacity_bytes", cap))
    except Exception:
        pass
    return int(min(cap * 3 // 4, 96 * 1024 * 1024))


def _pick_tile(n_p, cap):
    """Largest multiple-of-128 divisor of n_p that is <= cap (at least 128)."""
    best = 128
    t = 128
    limit = min(cap, n_p)
    while t <= limit:
        if n_p % t == 0:
            best = t
        t += 128
    return best


def _plan_layer(n_p, f_p, h_p, vmem_limit, block_m, block_k):
    """Pick (tm, tk, x_resident) for one fused GCN layer."""
    budget = int(vmem_limit * 0.85)
    # Keep >=2 row tiles so the 'parallel' axis can shard across v7x's 2 TCs.
    cap_m = block_m if n_p < 256 else min(block_m, n_p // 2)
    tm = _pick_tile(n_p, cap_m)
    tk = _pick_tile(n_p, block_k)
    while True:
        fixed = (f_p * h_p * 2          # resident W (bf16)
                 + tm * h_p * 4         # f32 accumulator
                 + 2 * tm * h_p * 2     # double-buffered output
                 + h_p * 4)             # bias
        a_bytes = 2 * tm * tk * 2       # double-buffered A_hat tiles
        resident_bytes = fixed + a_bytes + n_p * f_p * 2
        streamed_bytes = fixed + a_bytes + 2 * tk * f_p * 2
        if resident_bytes <= budget:
            return tm, tk, True
        if streamed_bytes <= budget:
            return tm, tk, False
        if tk > 128:
            tk = _pick_tile(n_p, tk // 2)
        elif tm > 128:
            tm = _pick_tile(n_p, tm // 2)
        else:
            return tm, tk, False


def _small_path_ok(n_p, f_p, h_p, vmem_limit):
    est = (n_p * n_p * 2                # A_hat bf16
           + n_p * f_p * 2              # X
           + n_p * h_p * 2              # output
           + (f_p + h_p) * h_p * 2      # W1, W2
           + 8 * n_p * h_p * 4)         # temporaries headroom
    return n_p <= 4096 and est <= vmem_limit // 2


# ----------------------------- Pallas kernels ------------------------------


def _gcn_layer_kernel(a_ref, x_ref, w_ref, b_ref, o_ref, acc_ref, *, tk,
                      x_resident):
    """Fused relu(A_hat @ (X @ W) + b) over a (row-tile, k-reduction) grid."""
    k = pl.program_id(1)

    @pl.when(k == 0)
    def _():
        acc_ref[...] = jnp.zeros_like(acc_ref)

    if x_resident:
        start = pl.multiple_of(k * tk, tk)
        x_slab = x_ref[pl.ds(start, tk), :]
    else:
        x_slab = x_ref[...]

    # Projection for this k-slab (bf16 MXU, f32 accumulate), then aggregation.
    xw = jnp.dot(x_slab, w_ref[...],
                 preferred_element_type=jnp.float32).astype(jnp.bfloat16)
    acc_ref[...] += jnp.dot(a_ref[...], xw, preferred_element_type=jnp.float32)

    @pl.when(k == pl.num_programs(1) - 1)
    def _():
        # NOTE: padded rows end up as relu(bias); harmless because padded
        # columns of A_hat are zero and the caller slices to [:n].
        o_ref[...] = jnp.maximum(acc_ref[...] + b_ref[...], 0.0).astype(o_ref.dtype)


def _fused_small_kernel(a_ref, x_ref, w1_ref, b1_ref, w2_ref, b2_ref, o_ref):
    """Both GCN layers in one call, all operands VMEM-resident (small graphs)."""
    xw1 = jnp.dot(x_ref[...], w1_ref[...],
                  preferred_element_type=jnp.float32).astype(jnp.bfloat16)
    h1 = jnp.maximum(
        jnp.dot(a_ref[...], xw1, preferred_element_type=jnp.float32)
        + b1_ref[...], 0.0).astype(jnp.bfloat16)
    xw2 = jnp.dot(h1, w2_ref[...],
                  preferred_element_type=jnp.float32).astype(jnp.bfloat16)
    h2 = jnp.maximum(
        jnp.dot(a_ref[...], xw2, preferred_element_type=jnp.float32)
        + b2_ref[...], 0.0)
    o_ref[...] = h2.astype(o_ref.dtype)


# ---------------------------- pallas_call wrappers --------------------------


def _gcn_layer(a_p, x_p, w_p, b_p, tm, tk, x_resident, vmem_limit):
    n_p = a_p.shape[0]
    f_p = x_p.shape[1]
    h_p = w_p.shape[1]

    kernel = functools.partial(_gcn_layer_kernel, tk=tk, x_resident=x_resident)
    if x_resident:
        x_spec = pl.BlockSpec((n_p, f_p), lambda i, k: (0, 0))   # resident slab
    else:
        x_spec = pl.BlockSpec((tk, f_p), lambda i, k: (k, 0))    # streamed slab

    return pl.pallas_call(
        kernel,
        out_shape=jax.ShapeDtypeStruct((n_p, h_p), jnp.bfloat16),
        grid_spec=pltpu.PrefetchScalarGridSpec(
            num_scalar_prefetch=0,
            grid=(n_p // tm, n_p // tk),
            in_specs=[
                pl.BlockSpec((tm, tk), lambda i, k: (i, k)),     # stream A_hat
                x_spec,
                pl.BlockSpec((f_p, h_p), lambda i, k: (0, 0)),   # W resident
                pl.BlockSpec((1, h_p), lambda i, k: (0, 0)),     # bias resident
            ],
            out_specs=pl.BlockSpec((tm, h_p), lambda i, k: (i, 0)),
            scratch_shapes=[pltpu.VMEM((tm, h_p), jnp.float32)],
        ),
        compiler_params=pltpu.CompilerParams(
            dimension_semantics=("parallel", "arbitrary"),
            vmem_limit_bytes=vmem_limit,
        ),
        cost_estimate=pl.CostEstimate(
            flops=2 * n_p * n_p * h_p + 2 * (n_p // tm) * n_p * f_p * h_p,
            transcendentals=0,
            bytes_accessed=2 * (n_p * n_p + n_p * f_p + f_p * h_p + n_p * h_p),
        ),
    )(a_p, x_p, w_p, b_p)


def _fused_small(a_p, x_p, w1_p, b1_p, w2_p, b2_p, vmem_limit):
    n_p = a_p.shape[0]
    h_p = w1_p.shape[1]
    return pl.pallas_call(
        _fused_small_kernel,
        out_shape=jax.ShapeDtypeStruct((n_p, h_p), jnp.bfloat16),
        compiler_params=pltpu.CompilerParams(vmem_limit_bytes=vmem_limit),
    )(a_p, x_p, w1_p, b1_p, w2_p, b2_p)


# ------------------------------ Forward pass -------------------------------


def gnn_recommender_forward(a_hat, x, w1, b1, w2, b2, wf, bfc, *,
                            block_m=1024, block_k=2048, force_tiled=False):
    """relu(A@(X@W1)+b1) -> relu(A@(.@W2)+b2) -> fc, with fused Pallas kernels."""
    n, f = x.shape
    h = w1.shape[1]
    f_p = _round_up(f, 128)
    h_p = _round_up(h, 128)
    n_p = _round_up(n, 128)          # padding decoupled from the tile size

    bb = jnp.bfloat16
    a_p = _pad2(a_hat, n_p, n_p).astype(bb)
    x_p = _pad2(x, n_p, f_p).astype(bb)
    w1_p = _pad2(w1, f_p, h_p).astype(bb)
    w2_p = _pad2(w2, h_p, h_p).astype(bb)
    b1_p = _pad2(b1, 1, h_p).astype(jnp.float32)
    b2_p = _pad2(b2, 1, h_p).astype(jnp.float32)

    vlim = _vmem_limit_bytes()

    if not force_tiled and _small_path_ok(n_p, f_p, h_p, vlim):
        h2 = _fused_small(a_p, x_p, w1_p, b1_p, w2_p, b2_p, vlim)
    else:
        tm1, tk1, res1 = _plan_layer(n_p, f_p, h_p, vlim, block_m, block_k)
        h1 = _gcn_layer(a_p, x_p, w1_p, b1_p, tm1, tk1, res1, vlim)
        tm2, tk2, res2 = _plan_layer(n_p, h_p, h_p, vlim, block_m, block_k)
        h2 = _gcn_layer(a_p, h1, w2_p, b2_p, tm2, tk2, res2, vlim)

    # Final Linear (N,H)@(H,1)+b: trivial GEMV kept in XLA to avoid a
    # lane-sparse (N,1) Pallas output (masked 1/128-lane stores).
    return h2[:n, :h].astype(jnp.float32) @ wf + bfc


def build_normalized_adjacency(edge_index, num_nodes):
    """Dense equivalent of PyG gcn_norm with add_self_loops=True (plain JAX glue)."""
    src, dst = edge_index[0], edge_index[1]
    a = jnp.zeros((num_nodes, num_nodes), jnp.float32).at[dst, src].add(1.0)
    a = a + jnp.eye(num_nodes, dtype=jnp.float32)
    deg = a.sum(axis=1)
    dinv = jnp.where(deg > 0, 1.0 / jnp.sqrt(deg), 0.0)
    return dinv[:, None] * a * dinv[None, :]


if __name__ == "__main__":
    num_nodes = 16
    num_features = 8
    hidden_channels = 32
    num_edges = 32

    key = jax.random.PRNGKey(0)
    kx, ke, k1, k2, k3, k4, k5, k6 = jax.random.split(key, 8)

    # Inputs
    x = jax.random.normal(kx, (num_nodes, num_features), jnp.float32)
    edge_index = jax.random.randint(ke, (2, num_edges), 0, num_nodes, jnp.int32)

    # Deterministic synthetic parameters
    w1 = jax.random.normal(k1, (num_features, hidden_channels), jnp.float32) * 0.1
    b1 = jax.random.normal(k2, (1, hidden_channels), jnp.float32) * 0.1
    w2 = jax.random.normal(k3, (hidden_channels, hidden_channels), jnp.float32) * 0.1
    b2 = jax.random.normal(k4, (1, hidden_channels), jnp.float32) * 0.1
    wf = jax.random.normal(k5, (hidden_channels, 1), jnp.float32) * 0.1
    bfc = jax.random.normal(k6, (1, 1), jnp.float32) * 0.1

    # Glue: sparse edge list -> dense normalized adjacency
    a_hat = build_normalized_adjacency(edge_index, num_nodes)

    # Small-graph fused single-call path (default for this size).
    out = gnn_recommender_forward(a_hat, x, w1, b1, w2, b2, wf, bfc)
    out = jax.block_until_ready(out)
    assert out.shape == (num_nodes, 1)

    # Tiled per-layer path (same math), exercised explicitly for coverage.
    out_tiled = gnn_recommender_forward(a_hat, x, w1, b1, w2, b2, wf, bfc,
                                        force_tiled=True)
    out_tiled = jax.block_until_ready(out_tiled)
    assert out_tiled.shape == (num_nodes, 1)

    # Mirror reference: same bf16-input / f32-accumulate recipe as the kernels.
    bb = jnp.bfloat16
    a_b, x_b = a_hat.astype(bb), x.astype(bb)
    xw1_r = jnp.dot(x_b, w1.astype(bb), preferred_element_type=jnp.float32).astype(bb)
    h1_r = jnp.maximum(
        jnp.dot(a_b, xw1_r, preferred_element_type=jnp.float32) + b1, 0.0
    ).astype(bb)
    xw2_r = jnp.dot(h1_r, w2.astype(bb), preferred_element_type=jnp.float32).astype(bb)
    h2_r = jnp.maximum(
        jnp.dot(a_b, xw2_r, preferred_element_type=jnp.float32) + b2, 0.0
    ).astype(bb)
    ref_bf16 = h2_r.astype(jnp.float32) @ wf + bfc
    assert jnp.allclose(out, ref_bf16, atol=2e-3, rtol=2e-3), (
        float(jnp.max(jnp.abs(out - ref_bf16)))
    )
    assert jnp.allclose(out_tiled, ref_bf16, atol=2e-3, rtol=2e-3), (
        float(jnp.max(jnp.abs(out_tiled - ref_bf16)))
    )

    # Loose sanity check against the original full-f32 module semantics.
    h1_f = jnp.maximum(a_hat @ (x @ w1) + b1, 0.0)
    h2_f = jnp.maximum(a_hat @ (h1_f @ w2) + b2, 0.0)
    ref_f32 = h2_f @ wf + bfc
    assert jnp.allclose(out, ref_f32, atol=5e-2, rtol=5e-2), (
        float(jnp.max(jnp.abs(out - ref_f32)))
    )
    assert jnp.allclose(out_tiled, ref_f32, atol=5e-2, rtol=5e-2), (
        float(jnp.max(jnp.abs(out_tiled - ref_f32)))
    )

    print("KERNEL_OK")
</pallas_src>

<mosaic_0001>
module attributes {stable_mosaic.version = 11 : i64} {
  func.func @_fused_small_kernel(%arg0: memref<128x128xbf16, #tpu.memory_space<vmem>>, %arg1: memref<128x128xbf16, #tpu.memory_space<vmem>>, %arg2: memref<128x128xbf16, #tpu.memory_space<vmem>>, %arg3: memref<1x128xf32, #tpu.memory_space<vmem>>, %arg4: memref<128x128xbf16, #tpu.memory_space<vmem>>, %arg5: memref<1x128xf32, #tpu.memory_space<vmem>>, %arg6: memref<128x128xbf16, #tpu.memory_space<vmem>>) attributes {dimension_semantics = [], scalar_prefetch = 0 : i64, scratch_operands = 0 : i64, tpu.core_type = #tpu.core_type<tc>} {
    %c0 = arith.constant 0 : index
    %c0_0 = arith.constant 0 : index
    %0 = vector.load %arg1[%c0, %c0_0] : memref<128x128xbf16, #tpu.memory_space<vmem>>, vector<128x128xbf16>
    %c0_1 = arith.constant 0 : index
    %c0_2 = arith.constant 0 : index
    %1 = vector.load %arg2[%c0_1, %c0_2] : memref<128x128xbf16, #tpu.memory_space<vmem>>, vector<128x128xbf16>
    %cst = arith.constant dense<0.000000e+00> : vector<128x128xf32>
    %2 = tpu.matmul %0, %1, %cst {dimension_numbers = #tpu.dot_dimension_numbers<[1], [0], [0], [1], [0, 0, 1, 1], [], []>} : vector<128x128xbf16>, vector<128x128xbf16>, vector<128x128xf32> -> vector<128x128xf32>
    %3 = arith.truncf %2 : vector<128x128xf32> to vector<128x128xbf16>
    %c0_3 = arith.constant 0 : index
    %c0_4 = arith.constant 0 : index
    %4 = vector.load %arg0[%c0_3, %c0_4] : memref<128x128xbf16, #tpu.memory_space<vmem>>, vector<128x128xbf16>
    %cst_5 = arith.constant dense<0.000000e+00> : vector<128x128xf32>
    %5 = tpu.matmul %4, %3, %cst_5 {dimension_numbers = #tpu.dot_dimension_numbers<[1], [0], [0], [1], [0, 0, 1, 1], [], []>} : vector<128x128xbf16>, vector<128x128xbf16>, vector<128x128xf32> -> vector<128x128xf32>
    %c0_6 = arith.constant 0 : index
    %c0_7 = arith.constant 0 : index
    %6 = vector.load %arg3[%c0_6, %c0_7] : memref<1x128xf32, #tpu.memory_space<vmem>>, vector<1x128xf32>
    %7 = vector.broadcast %6 : vector<1x128xf32> to vector<128x128xf32>
    %8 = arith.addf %5, %7 : vector<128x128xf32>
    %cst_8 = arith.constant 0.000000e+00 : f32
    %9 = vector.broadcast %cst_8 : f32 to vector<128x128xf32>
    %10 = arith.maximumf %8, %9 : vector<128x128xf32>
    %11 = arith.truncf %10 : vector<128x128xf32> to vector<128x128xbf16>
    %c0_9 = arith.constant 0 : index
    %c0_10 = arith.constant 0 : index
    %12 = vector.load %arg4[%c0_9, %c0_10] : memref<128x128xbf16, #tpu.memory_space<vmem>>, vector<128x128xbf16>
    %cst_11 = arith.constant dense<0.000000e+00> : vector<128x128xf32>
    %13 = tpu.matmul %11, %12, %cst_11 {dimension_numbers = #tpu.dot_dimension_numbers<[1], [0], [0], [1], [0, 0, 1, 1], [], []>} : vector<128x128xbf16>, vector<128x128xbf16>, vector<128x128xf32> -> vector<128x128xf32>
    %14 = arith.truncf %13 : vector<128x128xf32> to vector<128x128xbf16>
    %c0_12 = arith.constant 0 : index
    %c0_13 = arith.constant 0 : index
    %15 = vector.load %arg0[%c0_12, %c0_13] : memref<128x128xbf16, #tpu.memory_space<vmem>>, vector<128x128xbf16>
    %cst_14 = arith.constant dense<0.000000e+00> : vector<128x128xf32>
    %16 = tpu.matmul %15, %14, %cst_14 {dimension_numbers = #tpu.dot_dimension_numbers<[1], [0], [0], [1], [0, 0, 1, 1], [], []>} : vector<128x128xbf16>, vector<128x128xbf16>, vector<128x128xf32> -> vector<128x128xf32>
    %c0_15 = arith.constant 0 : index
    %c0_16 = arith.constant 0 : index
    %17 = vector.load %arg5[%c0_15, %c0_16] : memref<1x128xf32, #tpu.memory_space<vmem>>, vector<1x128xf32>
    %18 = vector.broadcast %17 : vector<1x128xf32> to vector<128x128xf32>
    %19 = arith.addf %16, %18 : vector<128x128xf32>
    %cst_17 = arith.constant 0.000000e+00 : f32
    %20 = vector.broadcast %cst_17 : f32 to vector<128x128xf32>
    %21 = arith.maximumf %19, %20 : vector<128x128xf32>
    %22 = arith.truncf %21 : vector<128x128xf32> to vector<128x128xbf16>
    %c0_18 = arith.constant 0 : index
    %c0_19 = arith.constant 0 : index
    %23 = vector.load %arg6[%c0_18, %c0_19] : memref<128x128xbf16, #tpu.memory_space<vmem>>, vector<128x128xbf16>
    tpu.vector_store %arg6[%c0_18, %c0_19], %22 {strides = array<i32>} : memref<128x128xbf16, #tpu.memory_space<vmem>>, vector<128x128xbf16>,
    return
  }
}

</mosaic_0001>

<bundles_post_ra>
// kernel: tpu_custom_call.1
= control target key start
LH: loop header
LB: loop body
LE: loop exit
PB: predicated region body
PF: predicated region fallthrough
CT: control target
= control target key end

     0   :  { %11 = vsyncpa [#allocation3], 0  ;;  %s1455_s0 = inlined_call_operand.hbm [shape: bf16[128,128], index: 0, kind: input, shape index: {}]   ;;  %s1456_s1 = inlined_call_operand.hbm [shape: bf16[128,128], index: 1, kind: input, shape index: {}]   ;;  %s1457_s2 = inlined_call_operand.hbm [shape: bf16[128,128], index: 2, kind: input, shape index: {}]   ;;  %s1458_s3 = inlined_call_operand.vmem [shape: f32[1,128], index: 3, kind: input, shape index: {}]   ;;  %s1459_s4 = inlined_call_operand.hbm [shape: bf16[128,128], index: 4, kind: input, shape index: {}]   ;;  %s1460_s5 = inlined_call_operand.vmem [shape: f32[1,128], index: 5, kind: input, shape index: {}]   ;;  %s1461_s6 = inlined_call_operand.hbm [shape: bf16[128,128], index: 6, kind: output, shape index: {}]  }
   0x1   :  { %12 = vsyncpa [#allocation6], 0 }
   0x2   :  { %13 = vsyncpa [#allocation9], 0 }
   0x3   :  { %14 = vsyncpa [#allocation4], 0  ;;  %s1345_s21 = smov [#allocation5]   ;;  %s1346_s23 = smov [#allocation2]  }
   0x4   :  { %s32_s22 = sshll.u32 %s1345_s21, 4  ;;  %s20_s24 = sshll.u32 %s1346_s23, 4  ;;  %s33_s22 = int_to_ptr.vmem [resolvable:$true] %s32_s22  ;;  %s21_s24 = int_to_ptr.vmem [resolvable:$true] %s20_s24 }
   0x5   :  { %s1245_s25 = scalar_lea.vmem %s33_s22, 1024  ;;  %p1250_p1 = scmp.lt.s32.totalorder %s33_s22, %s33_s22 }
   0x6   :  { %p1246_p0 = scmp.ne.s32.totalorder %s33_s22, %s1245_s25  ;;  %p1251_p2 = scmp.lt.s32.totalorder %s1245_s25, %s1245_s25 }
   0x8   :  { %p1252_p3 = por %p1251_p2, %p1250_p1 }
   0xa   :  { %p1253_p4 = pnand %p1252_p3, %p1246_p0 }
   0xc   :  { %1256 = shalt.err (!%p1253_p4)
}
   0xd   :  { %s1347_s26 = smov 64   ;;  %s1348_s27 = smov 4  }
   0xe   :  { %38 = dma.hbm_to_vmem [thread:$0]  %s1456_s1, 1024, %s33_s22, [#allocation6], %s1347_s26, %s1347_s26, %s1348_s27  }
   0xf   :  { %s1265_s30 = scalar_lea.vmem %s21_s24, 1024  ;;  %p1270_p6 = scmp.lt.s32.totalorder %s21_s24, %s21_s24 }
  0x10   :  { %p1266_p5 = scmp.ne.s32.totalorder %s21_s24, %s1265_s30  ;;  %p1271_p7 = scmp.lt.s32.totalorder %s1265_s30, %s1265_s30 }
  0x12   :  { %p1272_p8 = por %p1271_p7, %p1270_p6 }
  0x14   :  { %p1273_p9 = pnand %p1272_p8, %p1266_p5 }
  0x16   :  { %1276 = shalt.err (!%p1273_p9)
}
  0x17   :  { %26 = dma.hbm_to_vmem [thread:$0]  %s1455_s0, 1024, %s21_s24, [#allocation3], %s1347_s26, %s1347_s26, %s1348_s27  }
  0x18   :  { %s1349_s9 = smov [#allocation7]   ;;  %s1350_s11 = smov [#allocation8]  }
  0x19   :  { %s44_s10 = sshll.u32 %s1349_s9, 4  ;;  %s58_s12 = sshll.u32 %s1350_s11, 4  ;;  %s45_s10 = int_to_ptr.vmem [resolvable:$true] %s44_s10  ;;  %s59_s12 = int_to_ptr.vmem [resolvable:$true] %s58_s12 }
  0x1a   :  { %s1285_s1 = scalar_lea.vmem %s45_s10, 1024  ;;  %p1290_p11 = scmp.lt.s32.totalorder %s45_s10, %s45_s10 }
  0x1b   :  { %p1286_p10 = scmp.ne.s32.totalorder %s45_s10, %s1285_s1  ;;  %p1291_p12 = scmp.lt.s32.totalorder %s1285_s1, %s1285_s1 }
  0x1d   :  { %p1292_p13 = por %p1291_p12, %p1290_p11 }
  0x1f   :  { %p1293_p0 = pnand %p1292_p13, %p1286_p10 }
  0x21   :  { %1296 = shalt.err (!%p1293_p0)
}
  0x22   :  { %50 = dma.hbm_to_vmem [thread:$0]  %s1457_s2, 1024, %s45_s10, [#allocation6], %s1347_s26, %s1347_s26, %s1348_s27  }
  0x23   :  { %s1305_s0 = scalar_lea.vmem %s59_s12, 1024  ;;  %p1310_p2 = scmp.lt.s32.totalorder %s59_s12, %s59_s12 }
  0x24   :  { %p1306_p1 = scmp.ne.s32.totalorder %s59_s12, %s1305_s0  ;;  %p1311_p3 = scmp.lt.s32.totalorder %s1305_s0, %s1305_s0 }
  0x26   :  { %p1312_p4 = por %p1311_p3, %p1310_p2 }
  0x28   :  { %p1313_p5 = pnand %p1312_p4, %p1306_p1 }
  0x2a   :  { %1316 = shalt.err (!%p1313_p5)
}
  0x2b   :  { %64 = dma.hbm_to_vmem [thread:$0]  %s1459_s4, 1024, %s59_s12, [#allocation9], %s1347_s26, %s1347_s26, %s1348_s27  }
  0x2c   :  { %1337 = dma.done.wait [#allocation3], 1024  }
  0x2d   :  { %1338 = vsyncadd [#allocation3], 4294966272 }
  0x2e   :  { %1339 = dma.done.wait [#allocation6], 2048  }
  0x2f   :  { %1340 = vsyncadd [#allocation6], 4294965248 }
  0x30   :  { %1341 = dma.done.wait [#allocation9], 1024  }
  0x31   :  { %1342 = vsyncadd [#allocation9], 4294966272  ;;  %v1205_v0 = vld [vmem:[#allocation7 + $0x38] sm:$0xff]   ;;  %v1206_v1 = vld [vmem:[#allocation7 + $0x30] sm:$0xff]  }
  0x32   :  { %1070 = vmatprep.subr.bf16.mxu0 %v1205_v0  ;;  %v1207_v2 = vld [vmem:[#allocation7 + $0x28] sm:$0xff]   ;;  %v1208_v3 = vld [vmem:[#allocation7 + $0x20] sm:$0xff]   ;;  %v1209_v5 = vld [vmem:[#allocation7 + $0x18] sm:$0xff]  }
  0x33   :  { %1071 = vmatpush3.bf16.msra.mxu0 %v1205_v0  ;;  %v1213_v4 = vld [vmem:[#allocation5] sm:$0xff]   ;;  %v1210_v6 = vld [vmem:[#allocation7 + $0x10] sm:$0xff]   ;;  %v1211_v7 = vld [vmem:[#allocation7 + $0x8] sm:$0xff]  }
  0x34   :  { %1072 = vmatprep.subr.bf16.mxu0 %v1206_v1  ;;  %1086 = vmatprep.mubr.bf16.mxu0 %v1213_v4  ;;  %v1212_v8 = vld [vmem:[#allocation7] sm:$0xff]   ;;  %v1214_v9 = vld [vmem:[#allocation5 + $0x8] sm:$0xff]   ;;  %v1215_v10 = vld [vmem:[#allocation5 + $0x10] sm:$0xff]  }
  0x35   :  { %v1216_v11 = vld [vmem:[#allocation5 + $0x18] sm:$0xff]   ;;  %v1217_v12 = vld [vmem:[#allocation5 + $0x20] sm:$0xff]   ;;  %v1218_v13 = vld [vmem:[#allocation5 + $0x28] sm:$0xff]  }
  0x36   :  { %v1219_v14 = vld [vmem:[#allocation5 + $0x30] sm:$0xff]   ;;  %v1220_v15 = vld [vmem:[#allocation5 + $0x38] sm:$0xff]   ;;  %v1411_v16 = vld [vmem:[#allocation2] sm:$0xff]  }
  0x37   :  { %1073 = vmatpush3.bf16.msra.mxu0 %v1206_v1  ;;  %1118 = vmatprep.mubr.bf16.mxu1 %v1411_v16  ;;  %v1229_v17 = vld [vmem:[#allocation8 + $0x38] sm:$0xff]   ;;  %v1230_v18 = vld [vmem:[#allocation8 + $0x30] sm:$0xff]   ;;  %v1231_v19 = vld [vmem:[#allocation8 + $0x28] sm:$0xff]  }
  0x38   :  { %1074 = vmatprep.subr.bf16.mxu0 %v1207_v2  ;;  %v1232_v20 = vld [vmem:[#allocation8 + $0x20] sm:$0xff]   ;;  %v1233_v21 = vld [vmem:[#allocation8 + $0x18] sm:$0xff]   ;;  %v1414_v46 = vld [vmem:[#allocation2 + $0x8] sm:$0xff]  }
  0x39   :  { %v1416_v47 = vld [vmem:[#allocation2 + $0x10] sm:$0xff]   ;;  %v1420_v48 = vld [vmem:[#allocation2 + $0x18] sm:$0xff]   ;;  %v1422_v49 = vld [vmem:[#allocation2 + $0x20] sm:$0xff]  }
  0x3a   :  { %v1426_v50 = vld [vmem:[#allocation2 + $0x28] sm:$0xff]   ;;  %v1428_v51 = vld [vmem:[#allocation2 + $0x30] sm:$0xff]   ;;  %v1432_v52 = vld [vmem:[#allocation2 + $0x38] sm:$0xff]  }
  0x3b   :  { %1075 = vmatpush3.bf16.msra.mxu0 %v1207_v2  ;;  %v1234_v53 = vld [vmem:[#allocation8 + $0x10] sm:$0xff]   ;;  %v1235_v54 = vld [vmem:[#allocation8 + $0x8] sm:$0xff]   ;;  %v1236_v55 = vld [vmem:[#allocation8] sm:$0xff]  }
  0x3c   :  { %1076 = vmatprep.subr.bf16.mxu0 %v1208_v3  ;;  %v909_v58 = vld [vmem:[%s1458_s3] ss:$0 sm:$0xff] }
  0x3f   :  { %1077 = vmatpush3.bf16.msra.mxu0 %v1208_v3 }
  0x40   :  { %1078 = vmatprep.subr.bf16.mxu0 %v1209_v5 }
  0x43   :  { %1079 = vmatpush3.bf16.msra.mxu0 %v1209_v5 }
  0x44   :  { %1080 = vmatprep.subr.bf16.mxu0 %v1210_v6 }
  0x47   :  { %1081 = vmatpush3.bf16.msra.mxu0 %v1210_v6 }
  0x48   :  { %1082 = vmatprep.subr.bf16.mxu0 %v1211_v7 }
  0x4b   :  { %1083 = vmatpush3.bf16.msra.mxu0 %v1211_v7 }
  0x4c   :  { %1084 = vmatprep.subr.bf16.mxu0 %v1212_v8 }
  0x4f   :  { %1085 = vmatpush3.bf16.msra.mxu0 %v1212_v8 }
  0x50   :  { %1134 = vmatprep.subr.bf16.mxu0 %v1229_v17 }
  0x52   :  { %1087 = vmatmul.mubr.bf16.vlgmr.msra.gmra.mxu0 %v1214_v9 }
  0x53   :  { %1090 = vmatprep.mubr.bf16.mxu0 %v1215_v10  ;;  %1135 = vmatpush3.bf16.msra.mxu0 %v1229_v17 }
  0x54   :  { %1136 = vmatprep.subr.bf16.mxu0 %v1230_v18 }
  0x57   :  { %1137 = vmatpush3.bf16.msra.mxu0 %v1230_v18 }
  0x58   :  { %1138 = vmatprep.subr.bf16.mxu0 %v1231_v19 }
  0x5a   :  { %1091 = vmatmul.mubr.bf16.gmra.mxu0 %v1216_v11 }
  0x5b   :  { %1094 = vmatprep.mubr.bf16.mxu0 %v1217_v12  ;;  %1139 = vmatpush3.bf16.msra.mxu0 %v1231_v19 }
  0x5c   :  { %1140 = vmatprep.subr.bf16.mxu0 %v1232_v20 }
  0x5f   :  { %1141 = vmatpush3.bf16.msra.mxu0 %v1232_v20 }
  0x60   :  { %1142 = vmatprep.subr.bf16.mxu0 %v1233_v21 }
  0x62   :  { %1095 = vmatmul.mubr.bf16.gmra.mxu0 %v1218_v13 }
  0x63   :  { %1098 = vmatprep.mubr.bf16.mxu0 %v1219_v14  ;;  %1143 = vmatpush3.bf16.msra.mxu0 %v1233_v21 }
  0x64   :  { %1144 = vmatprep.subr.bf16.mxu0 %v1234_v53 }
  0x67   :  { %1145 = vmatpush3.bf16.msra.mxu0 %v1234_v53 }
  0x68   :  { %1146 = vmatprep.subr.bf16.mxu0 %v1235_v54 }
  0x6a   :  { %1099 = vmatmul.mubr.bf16.gmra.mxu0 %v1220_v15 }
  0x6b   :  { %1147 = vmatpush3.bf16.msra.mxu0 %v1235_v54 }
  0x6c   :  { %1148 = vmatprep.subr.bf16.mxu0 %v1236_v55 }
  0x6f   :  { %1149 = vmatpush3.bf16.msra.mxu0 %v1236_v55 }
 0x112   :  { %v1088_v22 = vpop.f32.mrf.mxu0 }
 0x114   :  { %v242_v23 = vpop.f32.mrf.mxu0 }
 0x116   :  { %v1089_v24 = vpop.f32.mrf.mxu0 }
 0x117   :  { %v306_v44 = vpack.c.bf16 %v1089_v24, %v1088_v22 }
 0x118   :  { %v245_v25 = vpop.f32.mrf.mxu0 }
 0x119   :  { %v305_v45 = vpack.c.bf16 %v245_v25, %v242_v23 }
 0x11a   :  { %v1092_v26 = vpop.f32.mrf.mxu0 }
 0x11c   :  { %v258_v27 = vpop.f32.mrf.mxu0 }
 0x11e   :  { %v1093_v28 = vpop.f32.mrf.mxu0 }
 0x11f   :  { %v308_v42 = vpack.c.bf16 %v1093_v28, %v1092_v26 }
 0x120   :  { %v261_v29 = vpop.f32.mrf.mxu0 }
 0x121   :  { %v307_v43 = vpack.c.bf16 %v261_v29, %v258_v27 }
 0x122   :  { %v1096_v30 = vpop.f32.mrf.mxu0 }
 0x124   :  { %v274_v31 = vpop.f32.mrf.mxu0 }
 0x126   :  { %v1097_v32 = vpop.f32.mrf.mxu0 }
 0x127   :  { %v310_v40 = vpack.c.bf16 %v1097_v32, %v1096_v30 }
 0x128   :  { %v277_v33 = vpop.f32.mrf.mxu0 }
 0x129   :  { %v309_v41 = vpack.c.bf16 %v277_v33, %v274_v31 }
 0x12a   :  { %v1100_v34 = vpop.f32.mrf.mxu0 }
 0x12c   :  { %v290_v35 = vpop.f32.mrf.mxu0 }
 0x12e   :  { %v1101_v36 = vpop.f32.mrf.mxu0 }
 0x12f   :  { %v312_v37 = vpack.c.bf16 %v1101_v36, %v1100_v34 }
 0x130   :  { %v293_v38 = vpop.f32.mrf.mxu0 }
 0x131   :  { %v311_v39 = vpack.c.bf16 %v293_v38, %v290_v35  ;;  %1102 = vmatprep.subr.bf16.mxu1 %v312_v37 }
 0x132   :  { %1103 = vmatpush3.bf16.msra.mxu1 %v312_v37 }
 0x133   :  { %1104 = vmatprep.subr.bf16.mxu1 %v311_v39 }
 0x136   :  { %1105 = vmatpush3.bf16.msra.mxu1 %v311_v39 }
 0x137   :  { %1106 = vmatprep.subr.bf16.mxu1 %v310_v40 }
 0x13a   :  { %1107 = vmatpush3.bf16.msra.mxu1 %v310_v40 }
 0x13b   :  { %1108 = vmatprep.subr.bf16.mxu1 %v309_v41 }
 0x13e   :  { %1109 = vmatpush3.bf16.msra.mxu1 %v309_v41 }
 0x13f   :  { %1110 = vmatprep.subr.bf16.mxu1 %v308_v42 }
 0x142   :  { %1111 = vmatpush3.bf16.msra.mxu1 %v308_v42 }
 0x143   :  { %1112 = vmatprep.subr.bf16.mxu1 %v307_v43 }
 0x146   :  { %1113 = vmatpush3.bf16.msra.mxu1 %v307_v43 }
 0x147   :  { %1114 = vmatprep.subr.bf16.mxu1 %v306_v44 }
 0x14a   :  { %1115 = vmatpush3.bf16.msra.mxu1 %v306_v44 }
 0x14b   :  { %1116 = vmatprep.subr.bf16.mxu1 %v305_v45 }
 0x14e   :  { %1117 = vmatpush3.bf16.msra.mxu1 %v305_v45 }
 0x151   :  { %1119 = vmatmul.mubr.bf16.vlgmr.msra.gmra.mxu1 %v1414_v46 }
 0x152   :  { %1122 = vmatprep.mubr.bf16.mxu1 %v1416_v47 }
 0x159   :  { %1123 = vmatmul.mubr.bf16.gmra.mxu1 %v1420_v48 }
 0x15a   :  { %1126 = vmatprep.mubr.bf16.mxu1 %v1422_v49 }
 0x161   :  { %1127 = vmatmul.mubr.bf16.gmra.mxu1 %v1426_v50 }
 0x162   :  { %1130 = vmatprep.mubr.bf16.mxu1 %v1428_v51 }
 0x169   :  { %1131 = vmatmul.mubr.bf16.gmra.mxu1 %v1432_v52 }
 0x16a   :  { %1182 = vmatprep.mubr.bf16.mxu1 %v1411_v16 }
 0x211   :  { %v1120_v56 = vpop.f32.mrf.mxu1 }
 0x212   :  { %v427_v62 = vadd.f32 %v1120_v56, %v909_v58 }
 0x213   :  { %v418_v57 = vpop.f32.mrf.mxu1 }
 0x214   :  { %v419_v60 = vadd.f32 %v909_v58, %v418_v57  ;;  %v483_v5 = vmax.f32 %v427_v62, 0.0 }
 0x215   :  { %v1121_v59 = vpop.f32.mrf.mxu1 }
 0x216   :  { %v430_v61 = vadd.f32 %v1121_v59, %v909_v58  ;;  %v481_v3 = vmax.f32 %v419_v60, 0.0 }
 0x217   :  { %v421_v63 = vpop.f32.mrf.mxu1 }
 0x218   :  { %v422_v0 = vadd.f32 %v909_v58, %v421_v63  ;;  %v484_v1 = vmax.f32 %v430_v61, 0.0 }
 0x219   :  { %v1124_v2 = vpop.f32.mrf.mxu1 }
 0x21a   :  { %v482_v4 = vmax.f32 %v422_v0, 0.0  ;;  %v498_v8 = vpack.c.bf16 %v484_v1, %v483_v5  ;;  %v443_v12 = vadd.f32 %v1124_v2, %v909_v58 }
 0x21b   :  { %v434_v6 = vpop.f32.mrf.mxu1 }
 0x21c   :  { %v497_v7 = vpack.c.bf16 %v482_v4, %v481_v3  ;;  %v435_v10 = vadd.f32 %v909_v58, %v434_v6  ;;  %v487_v19 = vmax.f32 %v443_v12, 0.0 }
 0x21d   :  { %v1125_v9 = vpop.f32.mrf.mxu1 }
 0x21e   :  { %v446_v11 = vadd.f32 %v1125_v9, %v909_v58  ;;  %1150 = vmatprep.mubr.bf16.mxu0 %v497_v7  ;;  %v485_v17 = vmax.f32 %v435_v10, 0.0 }
 0x21f   :  { %v437_v13 = vpop.f32.mrf.mxu1  ;;  %1151 = vmatmul.mubr.bf16.vlgmr.msra.gmra.mxu0 %v498_v8 }
 0x220   :  { %v438_v14 = vadd.f32 %v909_v58, %v437_v13  ;;  %v488_v15 = vmax.f32 %v446_v11, 0.0 }
 0x221   :  { %v1128_v16 = vpop.f32.mrf.mxu1 }
 0x222   :  { %v486_v18 = vmax.f32 %v438_v14, 0.0  ;;  %v500_v22 = vpack.c.bf16 %v488_v15, %v487_v19  ;;  %v459_v26 = vadd.f32 %v1128_v16, %v909_v58 }
 0x223   :  { %v450_v20 = vpop.f32.mrf.mxu1 }
 0x224   :  { %v499_v21 = vpack.c.bf16 %v486_v18, %v485_v17  ;;  %v451_v24 = vadd.f32 %v909_v58, %v450_v20  ;;  %v491_v33 = vmax.f32 %v459_v26, 0.0  ;;  %v926_v17 = vld [vmem:[%s1460_s5] ss:$0 sm:$0xff]  ;;  %s1351_s5 = smov [#allocation10]  }
 0x225   :  { %v1129_v23 = vpop.f32.mrf.mxu1  ;;  %s879_s18 = sshll.u32 %s1351_s5, 4  ;;  %s880_s18 = int_to_ptr.vmem [resolvable:$true] %s879_s18 }
 0x226   :  { %v462_v25 = vadd.f32 %v1129_v23, %v909_v58  ;;  %1154 = vmatprep.mubr.bf16.mxu0 %v499_v21  ;;  %v489_v31 = vmax.f32 %v451_v24, 0.0  ;;  %s1317_s19 = scalar_lea.vmem %s880_s18, 1024  ;;  %p1322_p7 = scmp.lt.s32.totalorder %s880_s18, %s880_s18 }
 0x227   :  { %v453_v27 = vpop.f32.mrf.mxu1  ;;  %1155 = vmatmul.mubr.bf16.gmra.mxu0 %v500_v22  ;;  %p1318_p6 = scmp.ne.s32.totalorder %s880_s18, %s1317_s19  ;;  %p1323_p8 = scmp.lt.s32.totalorder %s1317_s19, %s1317_s19 }
 0x228   :  { %v454_v28 = vadd.f32 %v909_v58, %v453_v27  ;;  %v492_v29 = vmax.f32 %v462_v25, 0.0 }
 0x229   :  { %v1132_v30 = vpop.f32.mrf.mxu1  ;;  %p1324_p9 = por %p1323_p8, %p1322_p7 }
 0x22a   :  { %v490_v32 = vmax.f32 %v454_v28, 0.0  ;;  %v502_v36 = vpack.c.bf16 %v492_v29, %v491_v33  ;;  %v475_v40 = vadd.f32 %v1132_v30, %v909_v58 }
 0x22b   :  { %v466_v34 = vpop.f32.mrf.mxu1  ;;  %p1325_p10 = pnand %p1324_p9, %p1318_p6 }
 0x22c   :  { %v501_v35 = vpack.c.bf16 %v490_v32, %v489_v31  ;;  %v467_v38 = vadd.f32 %v909_v58, %v466_v34  ;;  %v495_v53 = vmax.f32 %v475_v40, 0.0 }
 0x22d   :  { %v1133_v37 = vpop.f32.mrf.mxu1 }
 0x22e   :  { %v478_v39 = vadd.f32 %v1133_v37, %v909_v58  ;;  %1158 = vmatprep.mubr.bf16.mxu0 %v501_v35  ;;  %v493_v44 = vmax.f32 %v467_v38, 0.0 }
 0x22f   :  { %v469_v41 = vpop.f32.mrf.mxu1  ;;  %1159 = vmatmul.mubr.bf16.gmra.mxu0 %v502_v36 }
 0x230   :  { %v470_v42 = vadd.f32 %v909_v58, %v469_v41  ;;  %v496_v43 = vmax.f32 %v478_v39, 0.0 }
 0x232   :  { %v494_v45 = vmax.f32 %v470_v42, 0.0  ;;  %v504_v55 = vpack.c.bf16 %v496_v43, %v495_v53 }
 0x234   :  { %v503_v54 = vpack.c.bf16 %v494_v45, %v493_v44 }
 0x236   :  { %1162 = vmatprep.mubr.bf16.mxu0 %v503_v54 }
 0x237   :  { %1163 = vmatmul.mubr.bf16.gmra.mxu0 %v504_v55 }
 0x2df   :  { %v1152_v56 = vpop.f32.mrf.mxu0 }
 0x2e1   :  { %v603_v57 = vpop.f32.mrf.mxu0 }
 0x2e3   :  { %v1153_v59 = vpop.f32.mrf.mxu0 }
 0x2e4   :  { %v667_v14 = vpack.c.bf16 %v1153_v59, %v1152_v56 }
 0x2e5   :  { %v606_v60 = vpop.f32.mrf.mxu0 }
 0x2e6   :  { %v666_v15 = vpack.c.bf16 %v606_v60, %v603_v57 }
 0x2e7   :  { %v1156_v61 = vpop.f32.mrf.mxu0 }
 0x2e9   :  { %v619_v62 = vpop.f32.mrf.mxu0 }
 0x2eb   :  { %v1157_v63 = vpop.f32.mrf.mxu0 }
 0x2ec   :  { %v669_v12 = vpack.c.bf16 %v1157_v63, %v1156_v61 }
 0x2ed   :  { %v622_v0 = vpop.f32.mrf.mxu0 }
 0x2ee   :  { %v668_v13 = vpack.c.bf16 %v622_v0, %v619_v62 }
 0x2ef   :  { %v1160_v1 = vpop.f32.mrf.mxu0 }
 0x2f1   :  { %v635_v2 = vpop.f32.mrf.mxu0 }
 0x2f3   :  { %v1161_v3 = vpop.f32.mrf.mxu0 }
 0x2f4   :  { %v671_v10 = vpack.c.bf16 %v1161_v3, %v1160_v1 }
 0x2f5   :  { %v638_v58 = vpop.f32.mrf.mxu0 }
 0x2f6   :  { %v670_v11 = vpack.c.bf16 %v638_v58, %v635_v2 }
 0x2f7   :  { %v1164_v4 = vpop.f32.mrf.mxu0 }
 0x2f9   :  { %v651_v5 = vpop.f32.mrf.mxu0 }
 0x2fb   :  { %v1165_v6 = vpop.f32.mrf.mxu0 }
 0x2fc   :  { %v673_v7 = vpack.c.bf16 %v1165_v6, %v1164_v4 }
 0x2fd   :  { %v654_v8 = vpop.f32.mrf.mxu0 }
 0x2fe   :  { %v672_v9 = vpack.c.bf16 %v654_v8, %v651_v5  ;;  %1166 = vmatprep.subr.bf16.mxu1 %v673_v7 }
 0x2ff   :  { %1167 = vmatpush3.bf16.msra.mxu1 %v673_v7 }
 0x300   :  { %1168 = vmatprep.subr.bf16.mxu1 %v672_v9 }
 0x303   :  { %1169 = vmatpush3.bf16.msra.mxu1 %v672_v9 }
 0x304   :  { %1170 = vmatprep.subr.bf16.mxu1 %v671_v10 }
 0x307   :  { %1171 = vmatpush3.bf16.msra.mxu1 %v671_v10 }
 0x308   :  { %1172 = vmatprep.subr.bf16.mxu1 %v670_v11 }
 0x30b   :  { %1173 = vmatpush3.bf16.msra.mxu1 %v670_v11 }
 0x30c   :  { %1174 = vmatprep.subr.bf16.mxu1 %v669_v12 }
 0x30f   :  { %1175 = vmatpush3.bf16.msra.mxu1 %v669_v12 }
 0x310   :  { %1176 = vmatprep.subr.bf16.mxu1 %v668_v13 }
 0x313   :  { %1177 = vmatpush3.bf16.msra.mxu1 %v668_v13 }
 0x314   :  { %1178 = vmatprep.subr.bf16.mxu1 %v667_v14 }
 0x317   :  { %1179 = vmatpush3.bf16.msra.mxu1 %v667_v14 }
 0x318   :  { %1180 = vmatprep.subr.bf16.mxu1 %v666_v15 }
 0x31b   :  { %1181 = vmatpush3.bf16.msra.mxu1 %v666_v15 }
 0x31e   :  { %1183 = vmatmul.mubr.bf16.vlgmr.msra.gmra.mxu1 %v1414_v46 }
 0x31f   :  { %1186 = vmatprep.mubr.bf16.mxu1 %v1416_v47 }
 0x326   :  { %1187 = vmatmul.mubr.bf16.gmra.mxu1 %v1420_v48 }
 0x327   :  { %1190 = vmatprep.mubr.bf16.mxu1 %v1422_v49 }
 0x32e   :  { %1191 = vmatmul.mubr.bf16.gmra.mxu1 %v1426_v50 }
 0x32f   :  { %1194 = vmatprep.mubr.bf16.mxu1 %v1428_v51 }
 0x336   :  { %1195 = vmatmul.mubr.bf16.gmra.mxu1 %v1432_v52 }
 0x3de   :  { %v1184_v16 = vpop.f32.mrf.mxu1 }
 0x3df   :  { %v724_v19 = vadd.f32 %v1184_v16, %v926_v17 }
 0x3e0   :  { %v715_v18 = vpop.f32.mrf.mxu1 }
 0x3e1   :  { %v716_v20 = vadd.f32 %v926_v17, %v715_v18  ;;  %v780_v48 = vmax.f32 %v724_v19, 0.0 }
 0x3e2   :  { %v1185_v46 = vpop.f32.mrf.mxu1 }
 0x3e3   :  { %v727_v47 = vadd.f32 %v1185_v46, %v926_v17  ;;  %v778_v50 = vmax.f32 %v716_v20, 0.0 }
 0x3e4   :  { %v718_v21 = vpop.f32.mrf.mxu1 }
 0x3e5   :  { %v781_v22 = vmax.f32 %v727_v47, 0.0  ;;  %v719_v49 = vadd.f32 %v926_v17, %v718_v21 }
 0x3e6   :  { %v1188_v23 = vpop.f32.mrf.mxu1 }
 0x3e7   :  { %v967_v24 = vpack.c.bf16 %v781_v22, %v780_v48  ;;  %v779_v51 = vmax.f32 %v719_v49, 0.0  ;;  %v740_v26 = vadd.f32 %v1188_v23, %v926_v17 }
 0x3e8   :  { %v731_v25 = vpop.f32.mrf.mxu1 }
 0x3e9   :  { %999 = vst [vmem:[#allocation10 + $0x8] sm:$0xff] %v967_v24   ;;  %v962_v52 = vpack.c.bf16 %v779_v51, %v778_v50  ;;  %v732_v28 = vadd.f32 %v926_v17, %v731_v25  ;;  %v784_v31 = vmax.f32 %v740_v26, 0.0 }
 0x3ea   :  { %v1189_v27 = vpop.f32.mrf.mxu1 }
 0x3eb   :  { %963 = vst [vmem:[#allocation10] sm:$0xff] %v962_v52   ;;  %v743_v29 = vadd.f32 %v1189_v27, %v926_v17  ;;  %v782_v35 = vmax.f32 %v732_v28, 0.0 }
 0x3ec   :  { %v734_v30 = vpop.f32.mrf.mxu1 }
 0x3ed   :  { %v785_v32 = vmax.f32 %v743_v29, 0.0  ;;  %v735_v33 = vadd.f32 %v926_v17, %v734_v30 }
 0x3ee   :  { %v1192_v34 = vpop.f32.mrf.mxu1 }
 0x3ef   :  { %v977_v36 = vpack.c.bf16 %v785_v32, %v784_v31  ;;  %v783_v37 = vmax.f32 %v735_v33, 0.0  ;;  %v756_v40 = vadd.f32 %v1192_v34, %v926_v17 }
 0x3f0   :  { %v747_v38 = vpop.f32.mrf.mxu1 }
 0x3f1   :  { %1001 = vst [vmem:[#allocation10 + $0x18] sm:$0xff] %v977_v36   ;;  %v972_v39 = vpack.c.bf16 %v783_v37, %v782_v35  ;;  %v748_v42 = vadd.f32 %v926_v17, %v747_v38  ;;  %v788_v45 = vmax.f32 %v756_v40, 0.0 }
 0x3f2   :  { %v1193_v41 = vpop.f32.mrf.mxu1 }
 0x3f3   :  { %1000 = vst [vmem:[#allocation10 + $0x10] sm:$0xff] %v972_v39   ;;  %v759_v43 = vadd.f32 %v1193_v41, %v926_v17  ;;  %v786_v56 = vmax.f32 %v748_v42, 0.0 }
 0x3f4   :  { %v750_v44 = vpop.f32.mrf.mxu1 }
 0x3f5   :  { %v789_v53 = vmax.f32 %v759_v43, 0.0  ;;  %v751_v54 = vadd.f32 %v926_v17, %v750_v44 }
 0x3f6   :  { %v1196_v55 = vpop.f32.mrf.mxu1 }
 0x3f7   :  { %v987_v57 = vpack.c.bf16 %v789_v53, %v788_v45  ;;  %v787_v59 = vmax.f32 %v751_v54, 0.0  ;;  %v772_v62 = vadd.f32 %v1196_v55, %v926_v17 }
 0x3f8   :  { %v763_v60 = vpop.f32.mrf.mxu1 }
 0x3f9   :  { %1003 = vst [vmem:[#allocation10 + $0x28] sm:$0xff] %v987_v57   ;;  %v982_v61 = vpack.c.bf16 %v787_v59, %v786_v56  ;;  %v764_v0 = vadd.f32 %v926_v17, %v763_v60  ;;  %v792_v3 = vmax.f32 %v772_v62, 0.0 }
 0x3fa   :  { %v1197_v63 = vpop.f32.mrf.mxu1 }
 0x3fb   :  { %1002 = vst [vmem:[#allocation10 + $0x20] sm:$0xff] %v982_v61   ;;  %v775_v1 = vadd.f32 %v1197_v63, %v926_v17  ;;  %v790_v5 = vmax.f32 %v764_v0, 0.0 }
 0x3fc   :  { %v766_v2 = vpop.f32.mrf.mxu1 }
 0x3fd   :  { %v793_v58 = vmax.f32 %v775_v1, 0.0  ;;  %v767_v4 = vadd.f32 %v926_v17, %v766_v2 }
 0x3ff   :  { %v997_v6 = vpack.c.bf16 %v793_v58, %v792_v3  ;;  %v791_v7 = vmax.f32 %v767_v4, 0.0 }
 0x401   :  { %1005 = vst [vmem:[#allocation10 + $0x38] sm:$0xff] %v997_v6   ;;  %v992_v8 = vpack.c.bf16 %v791_v7, %v790_v5 }
 0x403   :  { %1004 = vst [vmem:[#allocation10 + $0x30] sm:$0xff] %v992_v8  }
 0x404   :  { %1328 = shalt.err (!%p1325_p10)
}
 0x405   :  { %885 = dma.vmem_to_hbm [thread:$0]  %s880_s18, 1024, %s1461_s6, [#allocation4], %s1347_s26, %s1347_s26, %s1348_s27  }
 0x406   :  { %1343 = dma.done.wait [#allocation4], 1024  }
 0x407   :  { %1344 = vsyncadd [#allocation4], 4294966272 }
 0x408   :  { %889 = vsyncpa [#allocation3], 1 }
 0x409   :  { %890 = vsyncpa [#allocation6], 1 }
 0x40a   :  { %891 = vsyncpa [#allocation9], 1 }
 0x40b   :  { %892 = vsyncpa [#allocation4], 1 }

</bundles_post_ra>
